<compile_context>
chip_gen: v5e
topology: v5e:2x2
jax: 0.10.0
libtpu: 0.0.40
codegen_flags: <defaults>
</compile_context>

<pallas_src>
import functools

import jax
import jax.numpy as jnp
from jax import lax
from jax.experimental import pallas as pl
from jax.experimental.pallas import tpu as pltpu


def _l_exp_kernel(x_ref, ah_ref, aw_ref, o_ref, *, mean_val):
    """One grid step = one (batch element, h-stripe).

    x_ref : (c, tile_h, w)        batch dim squeezed by the BlockSpec
    ah_ref: (tile_hp, c*tile_h)   row-pool matrix with 1/c channel mean folded in
    aw_ref: (w, wp)               col-pool matrix, entries 1/patch
    o_ref : (tile_hp, wp)         per-batch partial sum of squared errors,
                                  resident across the h-stripe grid axis
    """
    hi = pl.program_id(1)

    @pl.when(hi == 0)
    def _():
        o_ref[...] = jnp.zeros_like(o_ref)

    c, tile_h, w = x_ref.shape
    # Collapse (c, tile_h) -> (c*tile_h): layout-free when tile_h % 8 == 0.
    x2d = x_ref[...].reshape(c * tile_h, w)

    # Channel mean + row pooling in one lane-dense matmul (N = w >= 128 for
    # real inputs), then the small column-pool matmul.
    rows = jnp.dot(ah_ref[...], x2d,
                   preferred_element_type=jnp.float32,
                   precision=lax.Precision.HIGHEST)            # (tile_hp, w)
    pooled = jnp.dot(rows, aw_ref[...],
                     preferred_element_type=jnp.float32,
                     precision=lax.Precision.HIGHEST)          # (tile_hp, wp)

    diff = pooled - jnp.float32(mean_val)
    o_ref[...] += diff * diff


def _vmem_capacity_bytes():
    try:
        return int(pltpu.get_tpu_info().vmem_capacity_bytes)
    except Exception:
        return 128 * 1024 * 1024   # conservative default (v5e/v6e class)


def _stripe_cost_bytes(tile_h, tile_hp, c, w, patch_size, x_itemsize):
    wp = w // patch_size
    x_blk = 2 * c * tile_h * w * x_itemsize        # double-buffered input block
    ah = 2 * tile_hp * c * tile_h * 4              # row-pool matrix (buffered)
    aw = 2 * w * wp * 4                            # col-pool matrix (buffered)
    inter = tile_hp * w * 4                        # row-pooled intermediate
    out = 2 * tile_hp * wp * 4                     # per-batch output block
    return int((x_blk + ah + aw + inter + out) * 1.25)   # ~25% headroom


def _choose_tile_h(h, w, c, patch_size, x_itemsize, budget_bytes):
    """Largest h-stripe (multiple of patch_size, divides h, 8-aligned or == h)
    whose working set fits the VMEM budget; falls back to the SMALLEST aligned
    stripe (never the full height) if nothing fits."""
    hp = h // patch_size
    candidates = []   # (tile_h, tile_hp, aligned)
    for n in range(1, hp + 1):
        if hp % n:
            continue
        thp = hp // n
        th = thp * patch_size
        aligned = (th % 8 == 0) or (th == h)
        candidates.append((th, thp, aligned))

    fits = [th for th, thp, al in candidates
            if al and _stripe_cost_bytes(th, thp, c, w, patch_size,
                                         x_itemsize) <= budget_bytes]
    if fits:
        return max(fits)
    aligned_c = [th for th, _, al in candidates if al]
    if aligned_c:
        return min(aligned_c)
    return min(th for th, _, _ in candidates)


def l_exp_pallas(x, patch_size, mean_val):
    b, c, h, w = x.shape
    assert h % patch_size == 0 and w % patch_size == 0
    hp, wp = h // patch_size, w // patch_size

    cap = _vmem_capacity_bytes()
    # 16 MiB stripe budget on v7x (64 MiB VMEM), 24 MiB on v5e/v6e (128 MiB).
    budget = min(cap // 4, 24 * 1024 * 1024)
    # 48 MiB scoped-VMEM limit on v7x, 64 MiB on v5e/v6e (override is
    # load-bearing on v5e whose default scoped VMEM is only 16 MiB).
    vmem_limit = int(min(cap * 3 // 4, 64 * 1024 * 1024))

    tile_h = _choose_tile_h(h, w, c, patch_size, x.dtype.itemsize, budget)
    n_h = h // tile_h
    tile_hp = tile_h // patch_size

    # Pooling matrices; channel mean (1/c) folded into the row-pool matrix,
    # which also folds the channel-sum into the (lane-dense) first matmul.
    base = jnp.repeat(jnp.eye(tile_hp, dtype=jnp.float32), patch_size, axis=1)
    ah = jnp.tile(base, (1, c)) / jnp.float32(patch_size * c)   # (tile_hp, c*tile_h)
    aw = (jnp.repeat(jnp.eye(wp, dtype=jnp.float32), patch_size, axis=0)
          / jnp.float32(patch_size))                            # (w, wp)

    kernel = functools.partial(_l_exp_kernel, mean_val=float(mean_val))

    partials = pl.pallas_call(
        kernel,
        out_shape=jax.ShapeDtypeStruct((b, tile_hp, wp), jnp.float32),
        grid=(b, n_h),
        in_specs=[
            pl.BlockSpec((None, c, tile_h, w), lambda i, j: (i, 0, j, 0)),
            pl.BlockSpec((tile_hp, c * tile_h), lambda i, j: (0, 0)),
            pl.BlockSpec((w, wp), lambda i, j: (0, 0)),
        ],
        # Per-batch output block: resident across the h-stripe axis, distinct
        # per batch index -> batch axis is safely "parallel" (v7x: 2 TCs).
        out_specs=pl.BlockSpec((None, tile_hp, wp), lambda i, j: (i, 0, 0)),
        compiler_params=pltpu.CompilerParams(
            dimension_semantics=("parallel", "arbitrary"),
            vmem_limit_bytes=vmem_limit,
        ),
    )(x, ah, aw)

    # Sum the b per-batch partial tiles and normalize to the global mean.
    return jnp.sum(partials) / jnp.float32(b * hp * wp)


def l_exp_reference(x, patch_size, mean_val):
    xm = jnp.mean(x, axis=1, keepdims=True)                     # (b,1,h,w)
    b, _, h, w = xm.shape
    pooled = xm.reshape(b, 1, h // patch_size, patch_size,
                        w // patch_size, patch_size).mean(axis=(3, 5))
    return jnp.mean((pooled - mean_val) ** 2)


if __name__ == "__main__":
    patch_size = 4
    mean_val = 0.6

    key = jax.random.PRNGKey(0)
    x = jax.random.uniform(key, (2, 4, 16, 16), dtype=jnp.float32)  # NCHW

    d = l_exp_pallas(x, patch_size, mean_val)
    d = jax.block_until_ready(d)

    d_ref = l_exp_reference(x, patch_size, mean_val)
    assert jnp.allclose(d, d_ref, atol=1e-5, rtol=1e-5), (d, d_ref)

    print("KERNEL_OK")
</pallas_src>

<mosaic_0001>
module attributes {stable_mosaic.version = 11 : i64} {
  func.func @_l_exp_kernel(%arg0: i32, %arg1: i32, %arg2: memref<1x4x16x16xf32, #tpu.memory_space<vmem>>, %arg3: memref<4x64xf32, #tpu.memory_space<vmem>>, %arg4: memref<16x4xf32, #tpu.memory_space<vmem>>, %arg5: memref<1x4x4xf32, #tpu.memory_space<vmem>>) attributes {dimension_semantics = [#tpu.dimension_semantics<parallel>, #tpu.dimension_semantics<arbitrary>], iteration_bounds = array<i64: 2, 1>, scalar_prefetch = 0 : i64, scratch_operands = 0 : i64, tpu.core_type = #tpu.core_type<tc>, window_params = [{transform_indices = @transform_0, window_bounds = array<i64: 1, 4, 16, 16>}, {pipeline_mode = #tpu.pipeline_mode<synchronous>, transform_indices = @transform_1, window_bounds = array<i64: 4, 64>}, {pipeline_mode = #tpu.pipeline_mode<synchronous>, transform_indices = @transform_2, window_bounds = array<i64: 16, 4>}, {transform_indices = @transform_3, window_bounds = array<i64: 1, 4, 4>}]} {
    %c0_i32 = arith.constant 0 : i32
    %0 = arith.cmpi eq, %arg1, %c0_i32 : i32
    %1 = arith.extui %0 : i1 to i32
    %c0_i32_0 = arith.constant 0 : i32
    %2 = arith.cmpi ne, %1, %c0_i32_0 : i32
    scf.if %2 {
      %cst_16 = arith.constant 0.000000e+00 : f32
      %19 = vector.broadcast %cst_16 : f32 to vector<4x4xf32>
      %c0_17 = arith.constant 0 : index
      %c0_18 = arith.constant 0 : index
      %c0_19 = arith.constant 0 : index
      %20 = vector.load %arg5[%c0_17, %c0_18, %c0_19] : memref<1x4x4xf32, #tpu.memory_space<vmem>>, vector<1x4x4xf32>
      %21 = vector.shape_cast %20 : vector<1x4x4xf32> to vector<4x4xf32>
      %22 = vector.shape_cast %19 : vector<4x4xf32> to vector<1x4x4xf32>
      tpu.vector_store %arg5[%c0_17, %c0_18, %c0_19], %22 {strides = array<i32>} : memref<1x4x4xf32, #tpu.memory_space<vmem>>, vector<1x4x4xf32>,
    } else {
    }
    %c0 = arith.constant 0 : index
    %c0_1 = arith.constant 0 : index
    %c0_2 = arith.constant 0 : index
    %c0_3 = arith.constant 0 : index
    %3 = vector.load %arg2[%c0, %c0_1, %c0_2, %c0_3] : memref<1x4x16x16xf32, #tpu.memory_space<vmem>>, vector<1x4x16x16xf32>
    %4 = vector.shape_cast %3 : vector<1x4x16x16xf32> to vector<4x16x16xf32>
    %5 = vector.shape_cast %4 : vector<4x16x16xf32> to vector<64x16xf32>
    %c0_4 = arith.constant 0 : index
    %c0_5 = arith.constant 0 : index
    %6 = vector.load %arg3[%c0_4, %c0_5] : memref<4x64xf32, #tpu.memory_space<vmem>>, vector<4x64xf32>
    %cst = arith.constant dense<0.000000e+00> : vector<4x16xf32>
    %7 = tpu.matmul %6, %5, %cst {dimension_numbers = #tpu.dot_dimension_numbers<[1], [0], [0], [1], [0, 0, 1, 1], [], []>, precision = #tpu.contract_precision<fp32>} : vector<4x64xf32>, vector<64x16xf32>, vector<4x16xf32> -> vector<4x16xf32>
    %c0_6 = arith.constant 0 : index
    %c0_7 = arith.constant 0 : index
    %8 = vector.load %arg4[%c0_6, %c0_7] : memref<16x4xf32, #tpu.memory_space<vmem>>, vector<16x4xf32>
    %cst_8 = arith.constant dense<0.000000e+00> : vector<4x4xf32>
    %9 = tpu.matmul %7, %8, %cst_8 {dimension_numbers = #tpu.dot_dimension_numbers<[1], [0], [0], [1], [0, 0, 1, 1], [], []>, precision = #tpu.contract_precision<fp32>} : vector<4x16xf32>, vector<16x4xf32>, vector<4x4xf32> -> vector<4x4xf32>
    %cst_9 = arith.constant 6.000000e-01 : f32
    %10 = vector.broadcast %cst_9 : f32 to vector<4x4xf32>
    %11 = arith.subf %9, %10 : vector<4x4xf32>
    %c0_10 = arith.constant 0 : index
    %c0_11 = arith.constant 0 : index
    %c0_12 = arith.constant 0 : index
    %12 = vector.load %arg5[%c0_10, %c0_11, %c0_12] : memref<1x4x4xf32, #tpu.memory_space<vmem>>, vector<1x4x4xf32>
    %13 = vector.shape_cast %12 : vector<1x4x4xf32> to vector<4x4xf32>
    %14 = arith.mulf %11, %11 : vector<4x4xf32>
    %15 = arith.addf %13, %14 : vector<4x4xf32>
    %c0_13 = arith.constant 0 : index
    %c0_14 = arith.constant 0 : index
    %c0_15 = arith.constant 0 : index
    %16 = vector.load %arg5[%c0_13, %c0_14, %c0_15] : memref<1x4x4xf32, #tpu.memory_space<vmem>>, vector<1x4x4xf32>
    %17 = vector.shape_cast %16 : vector<1x4x4xf32> to vector<4x4xf32>
    %18 = vector.shape_cast %15 : vector<4x4xf32> to vector<1x4x4xf32>
    tpu.vector_store %arg5[%c0_13, %c0_14, %c0_15], %18 {strides = array<i32>} : memref<1x4x4xf32, #tpu.memory_space<vmem>>, vector<1x4x4xf32>,
    return
  }
  func.func @transform_0(%arg0: i32, %arg1: i32) -> (i32, i32, i32, i32) {
    %c0_i32 = arith.constant 0 : i32
    %c0_i32_0 = arith.constant 0 : i32
    %c0_i32_1 = arith.constant 0 : i32
    return %arg0, %c0_i32, %arg1, %c0_i32_0 : i32, i32, i32, i32
  }
  func.func @transform_1(%arg0: i32, %arg1: i32) -> (i32, i32) {
    %c0_i32 = arith.constant 0 : i32
    %c0_i32_0 = arith.constant 0 : i32
    %c0_i32_1 = arith.constant 0 : i32
    return %c0_i32, %c0_i32_0 : i32, i32
  }
  func.func @transform_2(%arg0: i32, %arg1: i32) -> (i32, i32) {
    %c0_i32 = arith.constant 0 : i32
    %c0_i32_0 = arith.constant 0 : i32
    %c0_i32_1 = arith.constant 0 : i32
    return %c0_i32, %c0_i32_0 : i32, i32
  }
  func.func @transform_3(%arg0: i32, %arg1: i32) -> (i32, i32, i32) {
    %c0_i32 = arith.constant 0 : i32
    %c0_i32_0 = arith.constant 0 : i32
    %c0_i32_1 = arith.constant 0 : i32
    return %arg0, %c0_i32, %c0_i32_0 : i32, i32, i32
  }
}

</mosaic_0001>

<bundles_post_ra>
// kernel: tpu_custom_call.1
= control target key start
LH: loop header
LB: loop body
LE: loop exit
PB: predicated region body
PF: predicated region fallthrough
CT: control target
= control target key end

     0   :  { %8 = vsyncpa [#allocation3], 0  ;;  %s1160_s0 = inlined_call_operand.hbm [shape: f32[2,4,16,16], index: 0, kind: input, shape index: {}]   ;;  %s1161_s1 = inlined_call_operand.vmem [shape: f32[4,64], index: 1, kind: input, shape index: {}]   ;;  %s1162_s2 = inlined_call_operand.vmem [shape: f32[16,4], index: 2, kind: input, shape index: {}]   ;;  %s1163_s3 = inlined_call_operand.hbm [shape: f32[2,4,4], index: 3, kind: output, shape index: {}]  }
   0x1   :  { %10 = vsyncpa [#allocation3 + $0x1], 0 }
   0x2   :  { %11 = vsyncpa [#allocation4], 0 }
   0x3   :  { %13 = vsyncpa [#allocation4 + $0x1], 0  ;;  %s950_s12 = smov 0   ;;  %s952_s13 = smov 0  }
   0x4   :  { %s954_s14 = smov 0   ;;  %s956_s15 = smov 0  }
   0x5   :  { %s958_s16 = smov 0   ;;  %s960_s17 = smov 0  }
   0x6 LB: > { %s732_s18 = sadd.s32 4294967295, %s925_s17   ;;  %s733_s19 = sadd.s32 4294967294, %s925_s17   ;;  %s925_s17 = sphi %s960_s17, %s19_s17   ;;  %s921_s16 = sphi %s958_s16, %s1172_s16   ;;  %s917_s15 = sphi %s956_s15, %s1171_s15   ;;  %s913_s14 = sphi %s954_s14, %s1170_s14   ;;  %s909_s13 = sphi %s952_s13, %s1169_s13   ;;  %s905_s12 = sphi %s950_s12, %s1168_s12  }
   0x7   : > { %s31_s20 = sadd.s32 1, %s921_s16  ;;  %s40_s21 = sadd.s32 1, %s913_s14 }
   0x8   : > { %p33_p0 = scmp.ge.s32.totalorder %s31_s20, 2  ;;  %p47_p1 = scmp.ne.s32.totalorder %s913_s14, %s909_s13 }
   0x9   : > { %p48_p2 = scmp.eq.s32.totalorder %s925_s17, 0  ;;  %p53_p3 = scmp.ne.s32.totalorder %s909_s13, %s905_s12 }
   0xa   : > { %s1174_s20 = smov (%p33_p0, %s31_s20), 0  ;;  %p54_p5 = scmp.eq.s32.totalorder %s732_s18, 0 }
   0xb   : > { %p991_p4 = por %p48_p2, %p47_p1  ;;  %s35_s23 = ssub.s32 %s921_s16, %s1174_s20 }
   0xc   : > { %p119_p6 = scmp.eq.s32.totalorder %s732_s18, 1  ;;  %p38_p7 = scmp.eq.s32.totalorder %s35_s23, 0 }
   0xd   : > { %p997_p8 = por %p54_p5, %p53_p3  ;;  %p125_p10 = scmp.eq.s32.totalorder %s733_s19, 1 }
   0xe   : > { %p1001_p9 = por %p119_p6, %p47_p1  ;;  %p735_p12 = scmp.ge.s32.totalorder %s925_s17, 2 }
   0xf   : > { %s1006_s26 = scalar_select %p38_p7, %s913_s14, %s40_s21  }
  0x10   : > { %p1008_p11 = por %p125_p10, %p53_p3  ;;  %p760_p13 = scmp.lt.s32.totalorder %s925_s17, 2 }
  0x11   : > { %s151_s28 = sand.u32 1, %s913_s14   ;;  %s747_s30 = sshll.u32 %s921_s16, 6 }
  0x12   : > { %s736_s29 = sshll.u32 %s151_s28, 6  ;;  %s162_s6 = scalar_lea.hbm %s1160_s0, %s747_s30 }
  0x13   : > { %s155_s7 = scalar_lea.vmem [#allocation2], %s736_s29  ;;  %s163_s9 = sshll.u32 %s162_s6, 4  ;;  %s164_s9 = int_to_ptr.hbm [resolvable:$true] %s163_s9 }
  0x14   : > { %s165_s8 = sshll.u32 %s155_s7, 4  ;;  %p753_p0 = pnand %p760_p13, %p991_p4  ;;  %s166_s8 = int_to_ptr.vmem [resolvable:$true] %s165_s8 }
  0x15   : > { %p739_p1 = scmp.ge.s32.totalorder %s925_s17, 1  ;;  %s152_s10 = scalar_lea.sflag [#allocation3], %s151_s28 }
  0x16   : > { %s927_s11 = smov 128   ;;  %s928_s18 = smov 8  }
  0x17   : > { %755 = dma.hbm_to_vmem [thread:$0]  (!%p753_p0), %s164_s9, 1024, %s166_s8, %s152_s10, %s927_s11, %s927_s11, %s928_s18  }
  0x18   : > { %p173_p2 = scmp.lt.s32.totalorder %s925_s17, 3 }
  0x1a   : > { %p174_p3 = pnand %p739_p1, %p173_p2 }
  0x1b   : > { %s1024_s19 = sand.u32 (!%p174_p3), 1, %s909_s13  }
  0x1c   : > { %177 = sbr.rel (%p174_p3) target bundleno = 372 (0x174), region = 32  ;;  %s740_s21 = sshll.u32 (!%p174_p3), %s1024_s19, 6 }
  0x1d   : > { %s180_s23 = scalar_lea.sflag (!%p174_p3), [#allocation3], %s1024_s19  ;;  %s183_s29 = scalar_lea.vmem (!%p174_p3), [#allocation2], %s740_s21 }
  0x21   : > { %896 = dma.done.wait (%p997_p8), %s180_s23, 1024  }
  0x22   : > { %898 = vsyncadd (%p997_p8), %s180_s23, 4294966272  ;;  %v221_v0 = vld [vmem:[%s183_s29 + $0x38] sm:$0xff]  ;;  %v220_v1 = vld [vmem:[%s183_s29 + $0x30] sm:$0xff]  ;;  %vm223_vm0 = vcmask 523264   ;;  %vm466_vm1 = vcmask 130048   ;;  %s741_s6 = sshll.u32 %s1024_s19, 2 }
  0x23   : > { %v219_v2 = vld [vmem:[%s183_s29 + $0x28] sm:$0xff]  ;;  %v1032_v3 = vand.u32 4294901760, %v221_v0  ;;  %v1034_v4 = vand.u32 4294901760, %v220_v1  ;;  %v218_v6 = vld [vmem:[%s183_s29 + $0x20] sm:$0xff]  ;;  %v217_v7 = vld [vmem:[%s183_s29 + $0x18] sm:$0xff]  ;;  %vm212_vm2 = vcmask 27648  }
  0x24   : > { %v1036_v5 = vand.u32 4294901760, %v219_v2  ;;  %v216_v8 = vld [vmem:[%s183_s29 + $0x10] sm:$0xff]  ;;  %v1038_v9 = vand.u32 4294901760, %v218_v6  ;;  %v1040_v10 = vand.u32 4294901760, %v217_v7  ;;  %v215_v12 = vld [vmem:[%s183_s29 + $0x8] sm:$0xff]  ;;  %v214_v13 = vld [vmem:[%s183_s29] sm:$0xff] }
  0x25   : > { %v1042_v11 = vand.u32 4294901760, %v216_v8  ;;  %236 = vmatpush.msra.mxu0 %v1032_v3  ;;  %v269_v14 = vsub.f32 %v221_v0, %v1032_v3  ;;  %v1047_v15 = vsub.f32 %v220_v1, %v1034_v4  ;;  %368 = vmatpush.msra.mxu3 %v1032_v3  ;;  %v1053_v17 = vand.u32 4294901760, %v215_v12  ;;  %v222_v32 = vld [vmem:[%s1161_s1] sm:$0xf]  ;;  %v465_v55 = vld [vmem:[%s1162_s2 + $0x8] sm:$0xff]  ;;  %s206_s7 = scalar_lea.vmem [#allocation5], %s741_s6 }
  0x26   : > { %v1051_v16 = vsub.f32 %v219_v2, %v1036_v5  ;;  %v1056_v18 = vsub.f32 %v218_v6, %v1038_v9  ;;  %v1059_v19 = vsub.f32 %v217_v7, %v1040_v10  ;;  %v1067_v24 = vand.u32 4294901760, %v214_v13  ;;  %v464_v57 = vld [vmem:[%s1162_s2] sm:$0xff]  ;;  %s744_s8 = sshll.u32 %s917_s15, 2  ;;  %s648_s18 = sshll.u32 %s206_s7, 4  ;;  %s649_s18 = int_to_ptr.vmem [resolvable:$true] %s648_s18 }
  0x27   : > { %v1062_v20 = vsub.f32 %v216_v8, %v1042_v11  ;;  %238 = vmatpush.msra.mxu0 %v1034_v4  ;;  %v270_v21 = vand.u32 4294901760, %v269_v14  ;;  %331 = vmatpush.msra.mxu2 %v269_v14  ;;  %v276_v22 = vand.u32 4294901760, %v1047_v15  ;;  %v1072_v26 = vsub.f32 %v215_v12, %v1053_v17  ;;  %s646_s11 = scalar_lea.hbm %s1163_s3, %s744_s8  ;;  %s636_s23 = scalar_lea.sflag [#allocation4], %s1024_s19 }
  0x28   : > { %v282_v23 = vand.u32 4294901760, %v1051_v16  ;;  %370 = vmatpush.msra.mxu3 %v1034_v4  ;;  %v288_v25 = vand.u32 4294901760, %v1056_v18  ;;  %v294_v30 = vand.u32 4294901760, %v1059_v19  ;;  %v311_v36 = vsub.f32 %v214_v13, %v1067_v24  ;;  %s650_s21 = sshll.u32 %s646_s11, 4  ;;  %s863_s28 = scalar_lea.hbm %s1163_s3, 8  ;;  %s651_s21 = int_to_ptr.hbm [resolvable:$true] %s650_s21 }
  0x29   : > { %240 = vmatpush.msra.mxu0 %v1036_v5  ;;  %v271_v27 = vsub.f32 %v269_v14, %v270_v21  ;;  %v277_v28 = vsub.f32 %v1047_v15, %v276_v22  ;;  %334 = vmatpush.msra.mxu2 %v1047_v15  ;;  %v300_v31 = vand.u32 4294901760, %v1062_v20  ;;  %v306_v39 = vand.u32 4294901760, %v1072_v26  ;;  %s857_s15 = sshra.s32 %s651_s21, 4  ;;  %s858_s15 = int_to_ptr.hbm [resolvable:$true] %s857_s15 }
  0x2a   : > { %v283_v29 = vsub.f32 %v1051_v16, %v282_v23  ;;  %372 = vmatpush.msra.mxu3 %v1036_v5  ;;  %v289_v35 = vsub.f32 %v1056_v18, %v288_v25  ;;  %v295_v38 = vsub.f32 %v1059_v19, %v294_v30  ;;  %v225_v40 = vsel %vm223_vm0, %v222_v32, 0  ;;  %s859_s29 = scalar_lea.hbm %s858_s15, 4  ;;  %p864_p7 = scmp.lt.s32.totalorder %s858_s15, %s1163_s3 }
  0x2b   : > { %v272_v33 = vand.u32 4294901760, %v271_v27  ;;  %242 = vmatpush.msra.mxu0 %v1038_v9  ;;  %v278_v34 = vand.u32 4294901760, %v277_v28  ;;  %337 = vmatpush.msra.mxu2 %v1051_v16  ;;  %v251_v41 = vand.u32 4294901760, %v225_v40  ;;  %v301_v43 = vsub.f32 %v1062_v20, %v300_v31  ;;  %p860_p4 = scmp.ne.s32.totalorder %s858_s15, %s859_s29  ;;  %p865_p8 = scmp.lt.s32.totalorder %s863_s28, %s859_s29 }
  0x2c   : > { %374 = vmatpush.msra.mxu3 %v1038_v9  ;;  %v284_v37 = vand.u32 4294901760, %v283_v29  ;;  %v290_v42 = vand.u32 4294901760, %v289_v35  ;;  %v312_v44 = vand.u32 4294901760, %v311_v36  ;;  %v296_v46 = vand.u32 4294901760, %v295_v38 }
  0x2d   : > { %273 = vmatpush.msra.mxu1 %v272_v33  ;;  %244 = vmatpush.msra.mxu0 %v1040_v10  ;;  %v252_v45 = vsub.f32 %v225_v40, %v251_v41  ;;  %v307_v47 = vsub.f32 %v1072_v26, %v306_v39  ;;  %v302_v49 = vand.u32 4294901760, %v301_v43  ;;  %v484_v56 = vand.u32 4294901760, %v465_v55  ;;  %p861_p5 = pnand %p860_p4, %p1001_p9  ;;  %p866_p10 = por %p865_p8, %p864_p7 }
  0x2e   : > { %340 = vmatpush.msra.mxu2 %v1056_v18  ;;  %376 = vmatpush.msra.mxu3 %v1040_v10  ;;  %v313_v50 = vsub.f32 %v311_v36, %v312_v44  ;;  %v486_v59 = vand.u32 4294901760, %v464_v57 }
  0x2f   : > { %279 = vmatpush.msra.mxu1 %v278_v34  ;;  %246 = vmatpush.msra.mxu0 %v1042_v11  ;;  %v253_v48 = vand.u32 4294901760, %v252_v45  ;;  %v308_v52 = vand.u32 4294901760, %v307_v47  ;;  %v512_v58 = vsub.f32 %v465_v55, %v484_v56  ;;  %p862_p6 = pneg %p861_p5 }
  0x30   : > { %343 = vmatpush.msra.mxu2 %v1059_v19  ;;  %378 = vmatpush.msra.mxu3 %v1042_v11  ;;  %v314_v54 = vand.u32 4294901760, %v313_v50  ;;  %v518_v61 = vsub.f32 %v464_v57, %v486_v59 }
  0x31   : > { %285 = vmatpush.msra.mxu1 %v284_v37  ;;  %248 = vmatpush.msra.mxu0 %v1053_v17  ;;  %v254_v51 = vsub.f32 %v252_v45, %v253_v48  ;;  %v513_v60 = vand.u32 4294901760, %v512_v58  ;;  %p867_p13 = pnand %p866_p10, %p862_p6 }
  0x32   : > { %346 = vmatpush.msra.mxu2 %v1062_v20  ;;  %380 = vmatpush.msra.mxu3 %v1053_v17  ;;  %v519_v63 = vand.u32 4294901760, %v518_v61  ;;  %v929_v20 = vmov 0.0  }
  0x33   : > { %291 = vmatpush.msra.mxu1 %v290_v42  ;;  %250 = vmatpush.msra.mxu0 %v1067_v24  ;;  %v255_v53 = vand.u32 4294901760, %v254_v51  ;;  %v514_v62 = vsub.f32 %v512_v58, %v513_v60  ;;  %213 = vst.msk [vmem:[%s206_s7] sm:$0xf] %vm212_vm2, %v929_v20 }
  0x34   : > { %349 = vmatpush.msra.mxu2 %v1072_v26  ;;  %382 = vmatpush.msra.mxu3 %v1067_v24  ;;  %v520_v1 = vsub.f32 %v518_v61, %v519_v63 }
  0x35   : > { %401 = vmatpush.msrb.mxu0 %v270_v21  ;;  %297 = vmatpush.msra.mxu1 %v296_v46  ;;  %v515_v0 = vand.u32 4294901760, %v514_v62 }
  0x36   : > { %352 = vmatpush.msra.mxu2 %v311_v36  ;;  %386 = vmatmul.f32.vlgmr.msra.gmra.mxu3 %v253_v48  ;;  %v521_v2 = vand.u32 4294901760, %v520_v1 }
  0x37   : > { %405 = vmatpush.msrb.mxu0 %v276_v22  ;;  %303 = vmatpush.msra.mxu1 %v302_v49 }
  0x38   : > { %355 = vmatmul.f32.vlgmr.msra.gmra.mxu2 %v252_v45  ;;  %256 = vmatmul.f32.vlgmr.msra.gmra.mxu0 %v255_v53 }
  0x39   : > { %409 = vmatpush.msrb.mxu0 %v282_v23  ;;  %309 = vmatpush.msra.mxu1 %v308_v52 }
  0x3a   : > { %485 = vmatpush.msrb.mxu2 %v484_v56  ;;  %516 = vmatpush.msrb.mxu3 %v515_v0  ;;  %v630_v33 = vld [vmem:[%s206_s7] sm:$0xf] }
  0x3b   : > { %413 = vmatpush.msrb.mxu0 %v288_v25  ;;  %315 = vmatpush.msra.mxu1 %v314_v54 }
  0x3c   : > { %317 = vmatmul.f32.vlgmr.msra.gmra.mxu1 %v251_v41  ;;  %487 = vmatpush.msrb.mxu2 %v486_v59 }
  0x3d   : > { %444 = vmatpush.msrb.mxu1 %v1032_v3  ;;  %417 = vmatpush.msrb.mxu0 %v294_v30 }
  0x3e   : > { %544 = vmatpush.msra.mxu2 %v512_v58  ;;  %522 = vmatpush.msrb.mxu3 %v521_v2 }
  0x3f   : > { %446 = vmatpush.msrb.mxu1 %v1034_v4  ;;  %421 = vmatpush.msrb.mxu0 %v300_v31 }
  0x40   : > { %547 = vmatpush.msra.mxu2 %v518_v61  ;;  %569 = vmatpush.msra.mxu3 %v484_v56 }
  0x41   : > { %448 = vmatpush.msrb.mxu1 %v1036_v5  ;;  %425 = vmatpush.msrb.mxu0 %v306_v39 }
  0x42   : > { %571 = vmatpush.msra.mxu3 %v486_v59 }
  0x43   : > { %450 = vmatpush.msrb.mxu1 %v1038_v9  ;;  %429 = vmatpush.msrb.mxu0 %v312_v44 }
  0x44   : > { %431 = vmatmul.f32.vlgmr.msrb.gmra.mxu0 %v251_v41 }
  0x45   : > { %452 = vmatpush.msrb.mxu1 %v1040_v10  ;;  %596 = vmatpush.msra.mxu0 %v513_v60 }
  0x47   : > { %454 = vmatpush.msrb.mxu1 %v1042_v11  ;;  %600 = vmatpush.msra.mxu0 %v519_v63 }
  0x49   : > { %456 = vmatpush.msrb.mxu1 %v1053_v17 }
  0x4b   : > { %458 = vmatpush.msrb.mxu1 %v1067_v24 }
  0x4c   : > { %460 = vmatmul.f32.vlgmr.msrb.gmra.mxu1 %v251_v41 }
  0x4d   : > { %621 = vmatpush.msra.mxu1 %v484_v56 }
  0x4f   : > { %623 = vmatpush.msra.mxu1 %v486_v59 }
  0xb5   : > { %v257_v3 = vpop.f32.mrf.mxu0 }
  0xb9   : > { %v318_v4 = vpop.f32.mrf.mxu1  ;;  %v387_v8 = vpop.f32.mrf.mxu3 }
  0xba   : > { %v319_v5 = vadd.f32 %v318_v4, %v257_v3 }
  0xbb   : > { %v356_v6 = vpop.f32.mrf.mxu2 }
  0xbc   : > { %v357_v7 = vadd.f32 %v356_v6, %v319_v5 }
  0xbe   : > { %v388_v9 = vadd.f32 %v387_v8, %v357_v7 }
  0xc1   : > { %v432_v10 = vpop.f32.mrf.mxu0 }
  0xc2   : > { %v433_v11 = vadd.f32 %v432_v10, %v388_v9 }
  0xc9   : > { %v461_v12 = vpop.f32.mrf.mxu1 }
  0xca   : > { %v462_v13 = vadd.f32 %v461_v12, %v433_v11 }
  0xcc   : > { %v468_v14 = vsel %vm466_vm1, %v462_v13, 0 }
  0xcd   : > { %v488_v15 = vand.u32 4294901760, %v468_v14 }
  0xcf   : > { %v489_v16 = vsub.f32 %v468_v14, %v488_v15  ;;  %524 = vmatmul.f32.vlgmr.msrb.gmra.mxu3 %v488_v15  ;;  %602 = vmatmul.f32.vlgmr.msra.gmra.mxu0 %v488_v15 }
  0xd0   : > { %625 = vmatmul.f32.vlgmr.msra.gmra.mxu1 %v488_v15 }
  0xd1   : > { %v490_v17 = vand.u32 4294901760, %v489_v16 }
  0xd3   : > { %v491_v18 = vsub.f32 %v489_v16, %v490_v17 }
  0xd5   : > { %v492_v19 = vand.u32 4294901760, %v491_v18 }
  0xd7   : > { %493 = vmatmul.f32.vlgmr.msrb.gmra.mxu2 %v492_v19  ;;  %575 = vmatmul.f32.vlgmr.msra.gmra.mxu3 %v490_v17 }
  0xdf   : > { %550 = vmatmul.f32.vlgmr.msra.gmra.mxu2 %v489_v16 }
 0x14c   : > { %v603_v28 = vpop.f32.mrf.mxu0 }
 0x14d   : > { %v626_v30 = vpop.f32.mrf.mxu1 }
 0x152   : > { %v525_v21 = vpop.f32.mrf.mxu3 }
 0x15a   : > { %v494_v22 = vpop.f32.mrf.mxu2  ;;  %v576_v26 = vpop.f32.mrf.mxu3 }
 0x15b   : > { %v526_v23 = vadd.f32 %v525_v21, %v494_v22 }
 0x162   : > { %v551_v24 = vpop.f32.mrf.mxu2 }
 0x163   : > { %v552_v25 = vadd.f32 %v551_v24, %v526_v23 }
 0x165   : > { %v577_v27 = vadd.f32 %v576_v26, %v552_v25 }
 0x167   : > { %v604_v29 = vadd.f32 %v603_v28, %v577_v27 }
 0x169   : > { %v627_v31 = vadd.f32 %v626_v30, %v604_v29 }
 0x16b   : > { %v742_v32 = vadd.f32 -0.6, %v627_v31 }
 0x16d   : > { %v631_v34 = vmul.f32 %v742_v32, %v742_v32 }
 0x16f   : > { %v632_v35 = vadd.f32 %v631_v34, %v630_v33 }
 0x171   : > { %634 = vst.msk [vmem:[%s206_s7] sm:$0xf] %vm212_vm2, %v632_v35 }
 0x172   : > { %870 = shalt.err (!%p867_p13)
}
 0x173   : > { %750 = dma.vmem_to_hbm [thread:$0]  (%p1001_p9), %s649_s18, 64, %s651_s21, %s636_s23  }
 0x174 PF: > { %s662_s19 = sand.u32 1, %s905_s12   ;;  %p757_p0 = pnand %p735_p12, %p1008_p11 }
 0x175   : > { %s663_s5 = scalar_lea.sflag [#allocation4], %s662_s19 }
 0x176   : > { %p758_p1 = pneg %p757_p0 }
 0x178   : > { %900 = dma.done.wait (%p758_p1), %s663_s5, 64  }
 0x179   : > { %902 = vsyncadd (%p758_p1), %s663_s5, 4294967232  ;;  %s19_s17 = sadd.s32 1, %s925_s17   ;;  %s1168_s12 = smov %s909_s13 }
 0x17a   : > { %p16_p2 = scmp.ge.s32.totalorder %s19_s17, 4   ;;  %s1169_s13 = smov %s913_s14 }
 0x17b   : > { %s1170_s14 = smov %s1006_s26  ;;  %s1171_s15 = smov %s921_s16 }
 0x17c   : > { %s1172_s16 = smov %s1174_s20  ;;  %18 = sbr.rel (!%p16_p2) target bundleno = 6 (0x6), region = 81 }
 0x181   :  { %669 = vsyncpa [#allocation3], 1 }
 0x182   :  { %671 = vsyncpa [#allocation3 + $0x1], 1 }
 0x183   :  { %672 = vsyncpa [#allocation4], 1 }
 0x184   :  { %674 = vsyncpa [#allocation4 + $0x1], 1 }

</bundles_post_ra>
